<compile_context>
chip_gen: v7x
topology: tpu7x:2x2x1
jax: 0.10.0
libtpu: 0.0.40
codegen_flags: <defaults>
</compile_context>

<pallas_src>
import functools

import jax
import jax.numpy as jnp
from jax.experimental import pallas as pl
from jax.experimental.pallas import tpu as pltpu


def _round_up(x, m):
    return (x + m - 1) // m * m


def _cdiv(a, b):
    return -(-a // b)


def _vmem_budget_bytes():
    # Generation-aware scoped-VMEM budget: ~3/4 of physical, capped at 96 MiB
    # (-> ~48 MiB on v7x's 64 MiB VMEM, 96 MiB on v5e/v6e's 128 MiB).
    try:
        cap = int(pltpu.get_tpu_info().vmem_capacity_bytes)
    except Exception:
        cap = 128 * 1024 * 1024
    return min(cap * 3 // 4, 96 * 1024 * 1024)


def _pick_rows(n_rows, block_rows, per_row_bytes, resident_bytes, vmem_budget):
    """Row-tile size: big to amortize per-step overhead, bounded by VMEM, and
    split into >= 2 parallel grid steps when there is enough work (v7x dual TC)."""
    tm = min(block_rows, _round_up(max(n_rows, 1), 8))
    if n_rows > 8:
        tm = min(tm, _round_up(_cdiv(n_rows, 2), 8))
    avail = max(vmem_budget - 2 * resident_bytes, 0)
    cap = max(8, (avail // max(per_row_bytes, 1)) // 8 * 8)
    return max(8, min(tm, cap))


def _pe_gather_fused_kernel(idx_ref, table_ref, out_ref, *, fold, max_len):
    """Folded fused gather: one matmul emits `fold` logical rows per lane-row.

    idx_ref:   (tm_f, 2*fold) int32 -- per folded row: fold x (ch0_idx, ch1_idx)
    table_ref: (fold*2*max_len, fold*d_model) block-diagonal gather table
    out_ref:   (tm_f, fold*d_model)  -- lane-dense store
    """
    idx = idx_ref[...]
    rows = table_ref.shape[0]
    tm_f = idx.shape[0]
    lane = jax.lax.broadcasted_iota(jnp.int32, (tm_f, rows), 1)
    onehot = None
    for j in range(fold):
        base = j * 2 * max_len
        hit = (lane == idx[:, 2 * j:2 * j + 1] + base) | (
            lane == idx[:, 2 * j + 1:2 * j + 2] + (base + max_len))
        onehot = hit if onehot is None else (onehot | hit)
    out_ref[...] = jnp.dot(
        onehot.astype(table_ref.dtype), table_ref[...],
        preferred_element_type=jnp.float32).astype(out_ref.dtype)


def _pe_gather_split_kernel(deltas_ref, t0_ref, t1_ref, out_ref):
    """Split gather (d_half % 128 == 0): two compact one-hot matmuls.

    deltas_ref:    (tm, 2) int32
    t0_ref/t1_ref: (max_len, d_half) per-channel tables
    out_ref:       (tm, 2*d_half); both half-stores are lane-dense.
    """
    d = deltas_ref[...]
    tm = d.shape[0]
    max_len, d_half = t0_ref.shape
    lane = jax.lax.broadcasted_iota(jnp.int32, (tm, max_len), 1)
    oh0 = (lane == d[:, 0:1]).astype(t0_ref.dtype)
    oh1 = (lane == d[:, 1:2]).astype(t1_ref.dtype)
    out_ref[:, :d_half] = jnp.dot(
        oh0, t0_ref[...], preferred_element_type=jnp.float32).astype(out_ref.dtype)
    out_ref[:, d_half:] = jnp.dot(
        oh1, t1_ref[...], preferred_element_type=jnp.float32).astype(out_ref.dtype)


def positional_encoding(deltas, pe, *, block_rows=2048):
    """deltas: [S, B, 2] int, pe: [max_len, 2, d_half] -> [S, B, 2*d_half]."""
    S, B, two = deltas.shape
    assert two == 2
    max_len, chans, d_half = pe.shape
    assert chans == 2
    d_model = 2 * d_half
    N = S * B
    out_itemsize = jnp.dtype(pe.dtype).itemsize
    vmem_budget = _vmem_budget_bytes()

    deltas_flat = deltas.reshape(N, 2).astype(jnp.int32)
    # Wrap like PyTorch negative indexing; avoids silent all-zero rows for OOB.
    deltas_flat = deltas_flat % max_len

    if d_half % 128 == 0:
        # ---------------- SPLIT path: two compact, lane-dense matmuls ----------
        table_bytes = 2 * max_len * d_half * out_itemsize
        per_row = (2 * 4 * max_len                 # two f32 one-hots
                   + 2 * d_model * out_itemsize    # double-buffered out tile
                   + 2 * 2 * 4)                    # double-buffered deltas tile
        tm = _pick_rows(N, block_rows, per_row, table_bytes, vmem_budget)
        n_pad = _round_up(max(N, 1), tm)
        if n_pad != N:
            deltas_flat = jnp.pad(deltas_flat, ((0, n_pad - N), (0, 0)))
        t0 = pe[:, 0, :]
        t1 = pe[:, 1, :]
        flops = 2 * N * max_len * d_model
        bytes_accessed = (deltas_flat.size * 4 + table_bytes
                          + N * d_model * out_itemsize)

        def run(table_mode):
            kw = {} if table_mode is None else {"pipeline_mode": table_mode}
            return pl.pallas_call(
                _pe_gather_split_kernel,
                out_shape=jax.ShapeDtypeStruct((n_pad, d_model), pe.dtype),
                grid_spec=pl.GridSpec(
                    grid=(n_pad // tm,),
                    in_specs=[
                        pl.BlockSpec((tm, 2), lambda i: (i, 0)),
                        pl.BlockSpec((max_len, d_half), lambda i: (0, 0), **kw),
                        pl.BlockSpec((max_len, d_half), lambda i: (0, 0), **kw),
                    ],
                    out_specs=pl.BlockSpec((tm, d_model), lambda i: (i, 0)),
                ),
                compiler_params=pltpu.CompilerParams(
                    dimension_semantics=("parallel",),
                    vmem_limit_bytes=vmem_budget),
                cost_estimate=pl.CostEstimate(
                    flops=flops, transcendentals=0,
                    bytes_accessed=bytes_accessed),
            )(deltas_flat, t0, t1)

        try:
            out = run(pl.Buffered(1))     # resident tables: single buffer
        except Exception:
            out = run(None)               # fallback: default pipelining
        out = out[:N]

    else:
        # ---------------- FUSED + FOLDED path (narrow d_model) ----------------
        fold = 128 // d_model if (d_model < 128 and 128 % d_model == 0) else 1
        n_fold = _cdiv(N, fold)
        k_dim = fold * 2 * max_len
        out_w = fold * d_model
        table_bytes = k_dim * out_w * out_itemsize
        per_row = (4 * k_dim                      # f32 one-hot row
                   + 2 * out_w * out_itemsize     # double-buffered out tile
                   + 2 * 2 * fold * 4)            # double-buffered idx tile
        tm_f = _pick_rows(n_fold, block_rows, per_row, table_bytes, vmem_budget)
        n_pad_f = _round_up(max(n_fold, 1), tm_f)
        n_rows_pad = n_pad_f * fold
        if n_rows_pad != N:
            deltas_flat = jnp.pad(deltas_flat, ((0, n_rows_pad - N), (0, 0)))
        idx = deltas_flat.reshape(n_pad_f, 2 * fold)

        # Block-diagonal table over (fold folds) x (2 channels): one matmul
        # emits the already-concatenated, lane-folded output tile.
        table = jnp.zeros((k_dim, out_w), dtype=pe.dtype)
        for j in range(fold):
            r0, c0 = j * 2 * max_len, j * d_model
            table = table.at[r0:r0 + max_len, c0:c0 + d_half].set(pe[:, 0, :])
            table = table.at[r0 + max_len:r0 + 2 * max_len,
                             c0 + d_half:c0 + d_model].set(pe[:, 1, :])

        flops = 2 * N * max_len * d_model   # useful gather MACs only
        bytes_accessed = (idx.size * 4 + table_bytes
                          + N * d_model * out_itemsize)
        kernel = functools.partial(_pe_gather_fused_kernel,
                                   fold=fold, max_len=max_len)

        def run(table_mode):
            kw = {} if table_mode is None else {"pipeline_mode": table_mode}
            return pl.pallas_call(
                kernel,
                out_shape=jax.ShapeDtypeStruct((n_pad_f, out_w), pe.dtype),
                grid_spec=pl.GridSpec(
                    grid=(n_pad_f // tm_f,),
                    in_specs=[
                        pl.BlockSpec((tm_f, 2 * fold), lambda i: (i, 0)),
                        pl.BlockSpec((k_dim, out_w), lambda i: (0, 0), **kw),
                    ],
                    out_specs=pl.BlockSpec((tm_f, out_w), lambda i: (i, 0)),
                ),
                compiler_params=pltpu.CompilerParams(
                    dimension_semantics=("parallel",),
                    vmem_limit_bytes=vmem_budget),
                cost_estimate=pl.CostEstimate(
                    flops=flops, transcendentals=0,
                    bytes_accessed=bytes_accessed),
            )(idx, table)

        try:
            out_f = run(pl.Buffered(1))   # resident table: single buffer
        except Exception:
            out_f = run(None)             # fallback: default pipelining
        out = out_f.reshape(n_pad_f * fold, d_model)[:N]

    return out.reshape(S, B, d_model)


def _reference(deltas, pe):
    pe1 = pe[deltas[..., 0], 0]
    pe2 = pe[deltas[..., 1], 1]
    return jnp.concatenate([pe1, pe2], axis=-1)


if __name__ == "__main__":
    key = jax.random.PRNGKey(0)

    # --- Test 1: module defaults (d_model=32, max_len=32) -> fused+folded path
    d_model, max_len = 32, 32
    d_half = d_model // 2
    seq_len, batch = 8, 2
    k_pe, k_idx, key = jax.random.split(key, 3)
    pe = jax.random.normal(k_pe, (max_len, 2, d_half), dtype=jnp.float32)
    deltas = jax.random.randint(k_idx, (seq_len, batch, 2), 0, max_len,
                                dtype=jnp.int32)
    out = jax.block_until_ready(positional_encoding(deltas, pe))
    ref = _reference(deltas, pe)
    assert out.shape == (seq_len, batch, d_model), out.shape
    assert jnp.allclose(out, ref, atol=1e-6), "fused path mismatch vs reference"

    # --- Test 2: wide model (d_half=128) -> split path (lane-dense halves)
    d_model2, max_len2 = 256, 16
    d_half2 = d_model2 // 2
    seq2, batch2 = 4, 2
    k_pe2, k_idx2, key = jax.random.split(key, 3)
    pe_w = jax.random.normal(k_pe2, (max_len2, 2, d_half2), dtype=jnp.float32)
    deltas_w = jax.random.randint(k_idx2, (seq2, batch2, 2), 0, max_len2,
                                  dtype=jnp.int32)
    out_w = jax.block_until_ready(positional_encoding(deltas_w, pe_w))
    ref_w = _reference(deltas_w, pe_w)
    assert out_w.shape == (seq2, batch2, d_model2), out_w.shape
    assert jnp.allclose(out_w, ref_w, atol=1e-6), "split path mismatch vs reference"

    print("KERNEL_OK")
</pallas_src>

<mosaic_0001>
module attributes {stable_mosaic.version = 11 : i64} {
  func.func @_pe_gather_fused_kernel(%arg0: i32, %arg1: memref<8x8xi32, #tpu.memory_space<vmem>>, %arg2: memref<256x128xf32, #tpu.memory_space<vmem>>, %arg3: memref<8x128xf32, #tpu.memory_space<vmem>>) attributes {dimension_semantics = [#tpu.dimension_semantics<parallel>], iteration_bounds = array<i64: 1>, scalar_prefetch = 0 : i64, scratch_operands = 0 : i64, tpu.core_type = #tpu.core_type<tc>, window_params = [{transform_indices = @transform_0, window_bounds = array<i64: 8, 8>}, {pipeline_mode = #tpu.pipeline_mode<synchronous>, transform_indices = @transform_1, window_bounds = array<i64: 256, 128>}, {transform_indices = @transform_2, window_bounds = array<i64: 8, 128>}]} {
    %c0 = arith.constant 0 : index
    %c0_0 = arith.constant 0 : index
    %0 = vector.load %arg1[%c0, %c0_0] : memref<8x8xi32, #tpu.memory_space<vmem>>, vector<8x8xi32>
    %1 = tpu.iota {dimensions = array<i32: 1>} : vector<8x256xi32>
    %2 = vector.extract_strided_slice %0 {offsets = [0, 0], sizes = [8, 1], strides = [1, 1]} : vector<8x8xi32> to vector<8x1xi32>
    %c0_i32 = arith.constant 0 : i32
    %3 = vector.broadcast %c0_i32 : i32 to vector<8x1xi32>
    %4 = arith.addi %2, %3 : vector<8x1xi32>
    %5 = vector.broadcast %4 : vector<8x1xi32> to vector<8x256xi32>
    %6 = arith.cmpi eq, %1, %5 : vector<8x256xi32>
    %7 = vector.extract_strided_slice %0 {offsets = [0, 1], sizes = [8, 1], strides = [1, 1]} : vector<8x8xi32> to vector<8x1xi32>
    %c32_i32 = arith.constant 32 : i32
    %8 = vector.broadcast %c32_i32 : i32 to vector<8x1xi32>
    %9 = arith.addi %7, %8 : vector<8x1xi32>
    %10 = vector.broadcast %9 : vector<8x1xi32> to vector<8x256xi32>
    %11 = arith.cmpi eq, %1, %10 : vector<8x256xi32>
    %12 = arith.ori %6, %11 : vector<8x256xi1>
    %13 = vector.extract_strided_slice %0 {offsets = [0, 2], sizes = [8, 1], strides = [1, 1]} : vector<8x8xi32> to vector<8x1xi32>
    %c64_i32 = arith.constant 64 : i32
    %14 = vector.broadcast %c64_i32 : i32 to vector<8x1xi32>
    %15 = arith.addi %13, %14 : vector<8x1xi32>
    %16 = vector.broadcast %15 : vector<8x1xi32> to vector<8x256xi32>
    %17 = arith.cmpi eq, %1, %16 : vector<8x256xi32>
    %18 = vector.extract_strided_slice %0 {offsets = [0, 3], sizes = [8, 1], strides = [1, 1]} : vector<8x8xi32> to vector<8x1xi32>
    %c96_i32 = arith.constant 96 : i32
    %19 = vector.broadcast %c96_i32 : i32 to vector<8x1xi32>
    %20 = arith.addi %18, %19 : vector<8x1xi32>
    %21 = vector.broadcast %20 : vector<8x1xi32> to vector<8x256xi32>
    %22 = arith.cmpi eq, %1, %21 : vector<8x256xi32>
    %23 = arith.ori %17, %22 : vector<8x256xi1>
    %24 = arith.ori %12, %23 : vector<8x256xi1>
    %25 = vector.extract_strided_slice %0 {offsets = [0, 4], sizes = [8, 1], strides = [1, 1]} : vector<8x8xi32> to vector<8x1xi32>
    %c128_i32 = arith.constant 128 : i32
    %26 = vector.broadcast %c128_i32 : i32 to vector<8x1xi32>
    %27 = arith.addi %25, %26 : vector<8x1xi32>
    %28 = vector.broadcast %27 : vector<8x1xi32> to vector<8x256xi32>
    %29 = arith.cmpi eq, %1, %28 : vector<8x256xi32>
    %30 = vector.extract_strided_slice %0 {offsets = [0, 5], sizes = [8, 1], strides = [1, 1]} : vector<8x8xi32> to vector<8x1xi32>
    %c160_i32 = arith.constant 160 : i32
    %31 = vector.broadcast %c160_i32 : i32 to vector<8x1xi32>
    %32 = arith.addi %30, %31 : vector<8x1xi32>
    %33 = vector.broadcast %32 : vector<8x1xi32> to vector<8x256xi32>
    %34 = arith.cmpi eq, %1, %33 : vector<8x256xi32>
    %35 = arith.ori %29, %34 : vector<8x256xi1>
    %36 = arith.ori %24, %35 : vector<8x256xi1>
    %37 = vector.extract_strided_slice %0 {offsets = [0, 6], sizes = [8, 1], strides = [1, 1]} : vector<8x8xi32> to vector<8x1xi32>
    %c192_i32 = arith.constant 192 : i32
    %38 = vector.broadcast %c192_i32 : i32 to vector<8x1xi32>
    %39 = arith.addi %37, %38 : vector<8x1xi32>
    %40 = vector.broadcast %39 : vector<8x1xi32> to vector<8x256xi32>
    %41 = arith.cmpi eq, %1, %40 : vector<8x256xi32>
    %42 = vector.extract_strided_slice %0 {offsets = [0, 7], sizes = [8, 1], strides = [1, 1]} : vector<8x8xi32> to vector<8x1xi32>
    %c224_i32 = arith.constant 224 : i32
    %43 = vector.broadcast %c224_i32 : i32 to vector<8x1xi32>
    %44 = arith.addi %42, %43 : vector<8x1xi32>
    %45 = vector.broadcast %44 : vector<8x1xi32> to vector<8x256xi32>
    %46 = arith.cmpi eq, %1, %45 : vector<8x256xi32>
    %47 = arith.ori %41, %46 : vector<8x256xi1>
    %48 = arith.ori %36, %47 : vector<8x256xi1>
    %49 = arith.extui %48 : vector<8x256xi1> to vector<8x256xi32>
    %50 = arith.sitofp %49 : vector<8x256xi32> to vector<8x256xf32>
    %c0_1 = arith.constant 0 : index
    %c0_2 = arith.constant 0 : index
    %51 = vector.load %arg2[%c0_1, %c0_2] : memref<256x128xf32, #tpu.memory_space<vmem>>, vector<256x128xf32>
    %cst = arith.constant dense<0.000000e+00> : vector<8x128xf32>
    %52 = tpu.matmul %50, %51, %cst {dimension_numbers = #tpu.dot_dimension_numbers<[1], [0], [0], [1], [0, 0, 1, 1], [], []>} : vector<8x256xf32>, vector<256x128xf32>, vector<8x128xf32> -> vector<8x128xf32>
    %c0_3 = arith.constant 0 : index
    %c0_4 = arith.constant 0 : index
    %53 = vector.load %arg3[%c0_3, %c0_4] : memref<8x128xf32, #tpu.memory_space<vmem>>, vector<8x128xf32>
    tpu.vector_store %arg3[%c0_3, %c0_4], %52 {strides = array<i32>} : memref<8x128xf32, #tpu.memory_space<vmem>>, vector<8x128xf32>,
    return
  }
  func.func @transform_0(%arg0: i32) -> (i32, i32) {
    %c0_i32 = arith.constant 0 : i32
    %c0_i32_0 = arith.constant 0 : i32
    return %arg0, %c0_i32 : i32, i32
  }
  func.func @transform_1(%arg0: i32) -> (i32, i32) {
    %c0_i32 = arith.constant 0 : i32
    %c0_i32_0 = arith.constant 0 : i32
    %c0_i32_1 = arith.constant 0 : i32
    return %c0_i32, %c0_i32_0 : i32, i32
  }
  func.func @transform_2(%arg0: i32) -> (i32, i32) {
    %c0_i32 = arith.constant 0 : i32
    %c0_i32_0 = arith.constant 0 : i32
    return %arg0, %c0_i32 : i32, i32
  }
}

module attributes {stable_mosaic.version = 11 : i64} {
  func.func @_pe_gather_fused_kernel(%arg0: i32, %arg1: memref<8x8xi32, #tpu.memory_space<vmem>>, %arg2: memref<256x128xf32, #tpu.memory_space<vmem>>, %arg3: memref<8x128xf32, #tpu.memory_space<vmem>>) attributes {dimension_semantics = [#tpu.dimension_semantics<parallel>], iteration_bounds = array<i64: 1>, scalar_prefetch = 0 : i64, scratch_operands = 0 : i64, tpu.core_type = #tpu.core_type<tc>, window_params = [{transform_indices = @transform_0, window_bounds = array<i64: 8, 8>}, {pipeline_mode = #tpu.pipeline_mode<synchronous>, transform_indices = @transform_1, window_bounds = array<i64: 256, 128>}, {transform_indices = @transform_2, window_bounds = array<i64: 8, 128>}]} {
    %c0 = arith.constant 0 : index
    %c0_0 = arith.constant 0 : index
    %0 = vector.load %arg1[%c0, %c0_0] : memref<8x8xi32, #tpu.memory_space<vmem>>, vector<8x8xi32>
    %1 = tpu.iota {dimensions = array<i32: 1>} : vector<8x256xi32>
    %2 = vector.extract_strided_slice %0 {offsets = [0, 0], sizes = [8, 1], strides = [1, 1]} : vector<8x8xi32> to vector<8x1xi32>
    %c0_i32 = arith.constant 0 : i32
    %3 = vector.broadcast %c0_i32 : i32 to vector<8x1xi32>
    %4 = arith.addi %2, %3 : vector<8x1xi32>
    %5 = vector.broadcast %4 : vector<8x1xi32> to vector<8x256xi32>
    %6 = arith.cmpi eq, %1, %5 : vector<8x256xi32>
    %7 = vector.extract_strided_slice %0 {offsets = [0, 1], sizes = [8, 1], strides = [1, 1]} : vector<8x8xi32> to vector<8x1xi32>
    %c32_i32 = arith.constant 32 : i32
    %8 = vector.broadcast %c32_i32 : i32 to vector<8x1xi32>
    %9 = arith.addi %7, %8 : vector<8x1xi32>
    %10 = vector.broadcast %9 : vector<8x1xi32> to vector<8x256xi32>
    %11 = arith.cmpi eq, %1, %10 : vector<8x256xi32>
    %12 = arith.ori %6, %11 : vector<8x256xi1>
    %13 = vector.extract_strided_slice %0 {offsets = [0, 2], sizes = [8, 1], strides = [1, 1]} : vector<8x8xi32> to vector<8x1xi32>
    %c64_i32 = arith.constant 64 : i32
    %14 = vector.broadcast %c64_i32 : i32 to vector<8x1xi32>
    %15 = arith.addi %13, %14 : vector<8x1xi32>
    %16 = vector.broadcast %15 : vector<8x1xi32> to vector<8x256xi32>
    %17 = arith.cmpi eq, %1, %16 : vector<8x256xi32>
    %18 = vector.extract_strided_slice %0 {offsets = [0, 3], sizes = [8, 1], strides = [1, 1]} : vector<8x8xi32> to vector<8x1xi32>
    %c96_i32 = arith.constant 96 : i32
    %19 = vector.broadcast %c96_i32 : i32 to vector<8x1xi32>
    %20 = arith.addi %18, %19 : vector<8x1xi32>
    %21 = vector.broadcast %20 : vector<8x1xi32> to vector<8x256xi32>
    %22 = arith.cmpi eq, %1, %21 : vector<8x256xi32>
    %23 = arith.ori %17, %22 : vector<8x256xi1>
    %24 = arith.ori %12, %23 : vector<8x256xi1>
    %25 = vector.extract_strided_slice %0 {offsets = [0, 4], sizes = [8, 1], strides = [1, 1]} : vector<8x8xi32> to vector<8x1xi32>
    %c128_i32 = arith.constant 128 : i32
    %26 = vector.broadcast %c128_i32 : i32 to vector<8x1xi32>
    %27 = arith.addi %25, %26 : vector<8x1xi32>
    %28 = vector.broadcast %27 : vector<8x1xi32> to vector<8x256xi32>
    %29 = arith.cmpi eq, %1, %28 : vector<8x256xi32>
    %30 = vector.extract_strided_slice %0 {offsets = [0, 5], sizes = [8, 1], strides = [1, 1]} : vector<8x8xi32> to vector<8x1xi32>
    %c160_i32 = arith.constant 160 : i32
    %31 = vector.broadcast %c160_i32 : i32 to vector<8x1xi32>
    %32 = arith.addi %30, %31 : vector<8x1xi32>
    %33 = vector.broadcast %32 : vector<8x1xi32> to vector<8x256xi32>
    %34 = arith.cmpi eq, %1, %33 : vector<8x256xi32>
    %35 = arith.ori %29, %34 : vector<8x256xi1>
    %36 = arith.ori %24, %35 : vector<8x256xi1>
    %37 = vector.extract_strided_slice %0 {offsets = [0, 6], sizes = [8, 1], strides = [1, 1]} : vector<8x8xi32> to vector<8x1xi32>
    %c192_i32 = arith.constant 192 : i32
    %38 = vector.broadcast %c192_i32 : i32 to vector<8x1xi32>
    %39 = arith.addi %37, %38 : vector<8x1xi32>
    %40 = vector.broadcast %39 : vector<8x1xi32> to vector<8x256xi32>
    %41 = arith.cmpi eq, %1, %40 : vector<8x256xi32>
    %42 = vector.extract_strided_slice %0 {offsets = [0, 7], sizes = [8, 1], strides = [1, 1]} : vector<8x8xi32> to vector<8x1xi32>
    %c224_i32 = arith.constant 224 : i32
    %43 = vector.broadcast %c224_i32 : i32 to vector<8x1xi32>
    %44 = arith.addi %42, %43 : vector<8x1xi32>
    %45 = vector.broadcast %44 : vector<8x1xi32> to vector<8x256xi32>
    %46 = arith.cmpi eq, %1, %45 : vector<8x256xi32>
    %47 = arith.ori %41, %46 : vector<8x256xi1>
    %48 = arith.ori %36, %47 : vector<8x256xi1>
    %49 = arith.extui %48 : vector<8x256xi1> to vector<8x256xi32>
    %50 = arith.sitofp %49 : vector<8x256xi32> to vector<8x256xf32>
    %c0_1 = arith.constant 0 : index
    %c0_2 = arith.constant 0 : index
    %51 = vector.load %arg2[%c0_1, %c0_2] : memref<256x128xf32, #tpu.memory_space<vmem>>, vector<256x128xf32>
    %cst = arith.constant dense<0.000000e+00> : vector<8x128xf32>
    %52 = tpu.matmul %50, %51, %cst {dimension_numbers = #tpu.dot_dimension_numbers<[1], [0], [0], [1], [0, 0, 1, 1], [], []>} : vector<8x256xf32>, vector<256x128xf32>, vector<8x128xf32> -> vector<8x128xf32>
    %c0_3 = arith.constant 0 : index
    %c0_4 = arith.constant 0 : index
    %53 = vector.load %arg3[%c0_3, %c0_4] : memref<8x128xf32, #tpu.memory_space<vmem>>, vector<8x128xf32>
    tpu.vector_store %arg3[%c0_3, %c0_4], %52 {strides = array<i32>} : memref<8x128xf32, #tpu.memory_space<vmem>>, vector<8x128xf32>,
    return
  }
  func.func @transform_0(%arg0: i32) -> (i32, i32) {
    %c0_i32 = arith.constant 0 : i32
    %c0_i32_0 = arith.constant 0 : i32
    return %arg0, %c0_i32 : i32, i32
  }
  func.func @transform_1(%arg0: i32) -> (i32, i32) {
    %c0_i32 = arith.constant 0 : i32
    %c0_i32_0 = arith.constant 0 : i32
    %c0_i32_1 = arith.constant 0 : i32
    return %c0_i32, %c0_i32_0 : i32, i32
  }
  func.func @transform_2(%arg0: i32) -> (i32, i32) {
    %c0_i32 = arith.constant 0 : i32
    %c0_i32_0 = arith.constant 0 : i32
    return %arg0, %c0_i32 : i32, i32
  }
}

</mosaic_0001>

<bundles_post_ra>
// kernel: tpu_custom_call.1
= control target key start
LH: loop header
LB: loop body
LE: loop exit
PB: predicated region body
PF: predicated region fallthrough
CT: control target
= control target key end

     0   :  { %7 = vsyncpa [#allocation3], 0  ;;  %s484_s0 = inlined_call_operand.hbm [shape: s32[8,8], index: 0, kind: input, shape index: {}]   ;;  %s485_s1 = inlined_call_operand.hbm [shape: f32[256,128], index: 1, kind: input, shape index: {}]   ;;  %s486_s2 = inlined_call_operand.hbm [shape: f32[8,128], index: 2, kind: output, shape index: {}]  }
   0x1   :  { %8 = vsyncpa [#allocation6], 0 }
   0x2   :  { %9 = vsyncpa [#allocation4], 0  ;;  %s390_s9 = smov [#allocation2]   ;;  %s391_s11 = smov [#allocation5]  }
   0x3   :  { %s16_s10 = sshll.u32 %s390_s9, 4  ;;  %s25_s12 = sshll.u32 %s391_s11, 4  ;;  %s17_s10 = int_to_ptr.vmem [resolvable:$true] %s16_s10  ;;  %s419_s12 = int_to_ptr.vmem [resolvable:$true] %s25_s12 }
   0x4   :  { %s318_s15 = scalar_lea.hbm %s484_s0, 128 }
   0x5   :  { %p319_p0 = scmp.ne.s32.totalorder %s484_s0, %s318_s15  ;;  %p322_p1 = scmp.lt.u32.totalorder %s318_s15, %s484_s0 }
   0x7   :  { %p324_p2 = pnand %p322_p1, %p319_p0 }
   0x9   :  { %327 = shalt.err (!%p324_p2)
}
   0xa   :  { %s328_s20 = scalar_lea.vmem %s17_s10, 128  ;;  %p333_p4 = scmp.lt.s32.totalorder %s17_s10, %s17_s10 }
   0xb   :  { %p329_p3 = scmp.ne.s32.totalorder %s17_s10, %s328_s20  ;;  %p334_p5 = scmp.lt.s32.totalorder %s328_s20, %s328_s20 }
   0xd   :  { %p335_p6 = por %p334_p5, %p333_p4 }
   0xf   :  { %p336_p7 = pnand %p335_p6, %p329_p3 }
  0x11   :  { %339 = shalt.err (!%p336_p7)
}
  0x12   :  { %19 = dma.hbm_to_vmem [thread:$0]  %s484_s0, 128, %s17_s10, [#allocation3]  }
  0x13   :  { %s340_s25 = scalar_lea.hbm %s485_s1, 4096 }
  0x14   :  { %p341_p8 = scmp.ne.s32.totalorder %s485_s1, %s340_s25  ;;  %p344_p9 = scmp.lt.u32.totalorder %s340_s25, %s485_s1 }
  0x16   :  { %p346_p10 = pnand %p344_p9, %p341_p8 }
  0x18   :  { %349 = shalt.err (!%p346_p10)
}
  0x19   :  { %s350_s30 = scalar_lea.vmem %s419_s12, 4096  ;;  %p355_p12 = scmp.lt.s32.totalorder %s419_s12, %s419_s12 }
  0x1a   :  { %p351_p11 = scmp.ne.s32.totalorder %s419_s12, %s350_s30  ;;  %p356_p13 = scmp.lt.s32.totalorder %s350_s30, %s350_s30 }
  0x1c   :  { %p357_p0 = por %p356_p13, %p355_p12 }
  0x1e   :  { %p358_p1 = pnand %p357_p0, %p351_p11 }
  0x20   :  { %361 = shalt.err (!%p358_p1)
}
  0x21   :  { %s392_s0 = smov 128   ;;  %s393_s3 = smov 8  }
  0x22   :  { %31 = dma.hbm_to_vmem [thread:$0]  %s485_s1, 4096, %s419_s12, [#allocation6], %s392_s0, %s392_s0, %s393_s3  }
  0x23   :  { %384 = dma.done.wait [#allocation3], 128  }
  0x24   :  { %385 = vsyncadd [#allocation3], 4294967168 }
  0x25   :  { %386 = dma.done.wait [#allocation6], 4096  }
  0x26   :  { %387 = vsyncadd [#allocation6], 4294963200  ;;  %v394_v0 = vmov 2   ;;  %v395_v1 = vmov 0   ;;  %v450_v2 = vld [vmem:[#allocation2] sm:$0xff]  ;;  %v123_v3 = vld [vmem:[#allocation5 + $0x80] sm:$0xff] }
  0x27   :  { %311 = vset.pattern.permute.xlu1 %v394_v0  ;;  %309 = vset.pattern.permute.xlu0 %v395_v1  ;;  %v124_v4 = vld [vmem:[#allocation5 + $0x88] sm:$0xff]  ;;  %v55_v5 = vadd.s32 64, %v450_v2  ;;  %v107_v6 = vld [vmem:[#allocation5] sm:$0xff]  ;;  %v47_v8 = vadd.s32 32, %v450_v2  ;;  %v125_v10 = vld [vmem:[#allocation5 + $0x90] sm:$0xff]  ;;  %v61_v18 = vadd.s32 96, %v450_v2 }
  0x28   :  { %43 = vperm.xlu0 %309, %v450_v2   ;;  %v108_v7 = vld [vmem:[#allocation5 + $0x8] sm:$0xff]  ;;  %v263_v9 = vpack.c.bf16 %v124_v4, %v123_v3  ;;  %v126_v11 = vld [vmem:[#allocation5 + $0x98] sm:$0xff]  ;;  %v109_v12 = vld [vmem:[#allocation5 + $0x10] sm:$0xff]  ;;  %v396_v19 = vmov 1   ;;  %v397_v24 = vmov 3   ;;  %v77_v25 = vadd.s32 160, %v450_v2 }
  0x29   :  { %57 = vperm.xlu1 %311, %v55_v5   ;;  %v265_v13 = vpack.c.bf16 %v108_v7, %v107_v6  ;;  %v267_v14 = vpack.c.bf16 %v126_v11, %v125_v10  ;;  %v110_v15 = vld [vmem:[#allocation5 + $0x18] sm:$0xff]  ;;  %v127_v16 = vld [vmem:[#allocation5 + $0xa0] sm:$0xff]  ;;  %v128_v17 = vld [vmem:[#allocation5 + $0xa8] sm:$0xff]  ;;  %v71_v28 = vadd.s32 128, %v450_v2  ;;  %v398_v30 = vmov 5   ;;  %s403_s1 = smov [#allocation7]  }
  0x2a   :  { %264 = vmatprep.subr.bf16.mxu0 %v263_v9  ;;  %v269_v20 = vpack.c.bf16 %v110_v15, %v109_v12  ;;  %v271_v21 = vpack.c.bf16 %v128_v17, %v127_v16  ;;  %v111_v22 = vld [vmem:[#allocation5 + $0x20] sm:$0xff]  ;;  %v112_v23 = vld [vmem:[#allocation5 + $0x28] sm:$0xff]  ;;  %v129_v26 = vld [vmem:[#allocation5 + $0xb0] sm:$0xff]  ;;  %v399_v36 = vmov 4   ;;  %v87_v38 = vadd.s32 192, %v450_v2  ;;  %s216_s6 = sshll.u32 %s403_s1, 4  ;;  %s217_s6 = int_to_ptr.vmem [resolvable:$true] %s216_s6 }
  0x2b   :  { %266 = vmatpush3.bf16.msra.mxu0 %v265_v13  ;;  %v130_v27 = vld [vmem:[#allocation5 + $0xb8] sm:$0xff]  ;;  %v273_v29 = vpack.c.bf16 %v112_v23, %v111_v22  ;;  %v113_v32 = vld [vmem:[#allocation5 + $0x30] sm:$0xff]  ;;  %v131_v34 = vld [vmem:[#allocation5 + $0xc0] sm:$0xff]  ;;  %v400_v44 = vmov 7   ;;  %v401_v45 = vmov 6   ;;  %v93_v50 = vadd.s32 224, %v450_v2  ;;  %p367_p3 = scmp.lt.s32.totalorder %s217_s6, %s217_s6 }
  0x2c   :  { %310 = vset.pattern.permute.xlu0 %v396_v19  ;;  %268 = vmatprep.subr.bf16.mxu0 %v267_v14  ;;  %v275_v31 = vpack.c.bf16 %v130_v27, %v129_v26  ;;  %v114_v33 = vld [vmem:[#allocation5 + $0x38] sm:$0xff]  ;;  %v132_v35 = vld [vmem:[#allocation5 + $0xc8] sm:$0xff]  ;;  %v115_v40 = vld [vmem:[#allocation5 + $0x40] sm:$0xff]  ;;  %v39_v2 = vlaneseq  ;;  %v402_v13 = vmov 0.0   ;;  %s362_s7 = scalar_lea.vmem %s217_s6, 128 }
  0x2d   :  { %49 = vperm.xlu0 %310, %v47_v8   ;;  %312 = vset.pattern.permute.xlu1 %v397_v24  ;;  %v277_v37 = vpack.c.bf16 %v114_v33, %v113_v32  ;;  %v279_v39 = vpack.c.bf16 %v132_v35, %v131_v34  ;;  %v116_v41 = vld [vmem:[#allocation5 + $0x48] sm:$0xff]  ;;  %v133_v42 = vld [vmem:[#allocation5 + $0xd0] sm:$0xff]  ;;  %v134_v43 = vld [vmem:[#allocation5 + $0xd8] sm:$0xff]  ;;  %p363_p2 = scmp.ne.s32.totalorder %s217_s6, %s362_s7  ;;  %p368_p4 = scmp.lt.s32.totalorder %s362_s7, %s362_s7 }
  0x2e   :  { %63 = vperm.xlu1 %312, %v61_v18   ;;  %v281_v46 = vpack.c.bf16 %v116_v41, %v115_v40  ;;  %v283_v47 = vpack.c.bf16 %v134_v43, %v133_v42  ;;  %v117_v48 = vld [vmem:[#allocation5 + $0x50] sm:$0xff]  ;;  %v118_v49 = vld [vmem:[#allocation5 + $0x58] sm:$0xff]  ;;  %v135_v51 = vld [vmem:[#allocation5 + $0xe0] sm:$0xff]  ;;  %v40_v3 = vand.u32 127, %v39_v2 }
  0x2f   :  { %270 = vmatpush3.bf16.msra.mxu0 %v269_v20  ;;  %v136_v52 = vld [vmem:[#allocation5 + $0xe8] sm:$0xff]  ;;  %v285_v53 = vpack.c.bf16 %v118_v49, %v117_v48  ;;  %v119_v55 = vld [vmem:[#allocation5 + $0x60] sm:$0xff]  ;;  %v137_v57 = vld [vmem:[#allocation5 + $0xf0] sm:$0xff]  ;;  %p369_p5 = por %p368_p4, %p367_p3 }
  0x30   :  { %272 = vmatprep.subr.bf16.mxu0 %v271_v21  ;;  %v287_v54 = vpack.c.bf16 %v136_v52, %v135_v51  ;;  %v120_v56 = vld [vmem:[#allocation5 + $0x68] sm:$0xff]  ;;  %v138_v58 = vld [vmem:[#allocation5 + $0xf8] sm:$0xff]  ;;  %v121_v61 = vld [vmem:[#allocation5 + $0x70] sm:$0xff]  ;;  %v41_v6 = vadd.s32 128, %v40_v3 }
  0x31   :  { %314 = vset.pattern.permute.xlu0 %v398_v30  ;;  %v289_v59 = vpack.c.bf16 %v120_v56, %v119_v55  ;;  %v291_v60 = vpack.c.bf16 %v138_v58, %v137_v57  ;;  %v122_v62 = vld [vmem:[#allocation5 + $0x78] sm:$0xff]  ;;  %p370_p6 = pnand %p369_p5, %p363_p2 }
  0x32   :  { %79 = vperm.xlu0 %314, %v77_v25   ;;  %313 = vset.pattern.permute.xlu1 %v399_v36  ;;  %v293_v63 = vpack.c.bf16 %v122_v62, %v121_v61 }
  0x33   :  { %73 = vperm.xlu1 %313, %v71_v28   ;;  %274 = vmatpush3.bf16.msra.mxu0 %v273_v29 }
  0x34   :  { %276 = vmatprep.subr.bf16.mxu0 %v275_v31 }
  0x36   :  { %317 = vset.pattern.permute.xlu0 %v400_v44 }
  0x37   :  { %315 = vset.pattern.permute.xlu1 %v401_v45  ;;  %278 = vmatpush3.bf16.msra.mxu0 %v277_v37 }
  0x38   :  { %89 = vperm.xlu1 %315, %v87_v38   ;;  %280 = vmatprep.subr.bf16.mxu0 %v279_v39 }
  0x3b   :  { %282 = vmatpush3.bf16.msra.mxu0 %v281_v46 }
  0x3c   :  { %316 = vset.pattern.permute.xlu1 %v400_v44  ;;  %284 = vmatprep.subr.bf16.mxu0 %v283_v47 }
  0x3d   :  { %95 = vperm.xlu1 %316, %v93_v50  }
  0x3f   :  { %286 = vmatpush3.bf16.msra.mxu0 %v285_v53 }
  0x40   :  { %288 = vmatprep.subr.bf16.mxu0 %v287_v54 }
  0x43   :  { %290 = vmatpush3.bf16.msra.mxu0 %v289_v59 }
  0x44   :  { %292 = vmatprep.subr.bf16.mxu0 %v291_v60 }
  0x47   :  { %294 = vmatpush3.bf16.msra.mxu0 %v293_v63 }
  0xa7   :  { %v44_v0 = vpop.permute.xlu0 %43 }
  0xa8   :  { %v58_v1 = vpop.permute.xlu1 %57  ;;  %vm45_vm0 = vcmp.eq.s32.totalorder %v40_v3, %v44_v0  ;;  %vm46_vm3 = vcmp.eq.s32.totalorder %v41_v6, %v44_v0 }
  0xa9   :  { %vm59_vm5 = vcmp.eq.s32.totalorder %v40_v3, %v58_v1  ;;  %vm60_vm9 = vcmp.eq.s32.totalorder %v41_v6, %v58_v1 }
  0xac   :  { %v50_v5 = vpop.permute.xlu0 %49 }
  0xad   :  { %v64_v4 = vpop.permute.xlu1 %63  ;;  %vm51_vm1 = vcmp.eq.s32.totalorder %v40_v3, %v50_v5  ;;  %vm52_vm4 = vcmp.eq.s32.totalorder %v41_v6, %v50_v5 }
  0xae   :  { %vm65_vm2 = vcmp.eq.s32.totalorder %v40_v3, %v64_v4  ;;  %vm66_vm6 = vcmp.eq.s32.totalorder %v41_v6, %v64_v4  ;;  %vm460_vm7 = vmor %vm45_vm0, %vm51_vm1 }
  0xaf   :  { %vm67_vm8 = vmor %vm59_vm5, %vm65_vm2 }
  0xb0   :  { %vm464_vm10 = vmor %vm46_vm3, %vm52_vm4 }
  0xb1   :  { %v80_v8 = vpop.permute.xlu0 %79  ;;  %vm68_vm13 = vmor %vm60_vm9, %vm66_vm6 }
  0xb2   :  { %v74_v7 = vpop.permute.xlu1 %73  ;;  %vm81_vm12 = vcmp.eq.s32.totalorder %v40_v3, %v80_v8  ;;  %vm82_vm15 = vcmp.eq.s32.totalorder %v41_v6, %v80_v8  ;;  %vm69_vm0 = vmor %vm460_vm7, %vm67_vm8 }
  0xb3   :  { %vm75_vm11 = vcmp.eq.s32.totalorder %v40_v3, %v74_v7  ;;  %vm76_vm14 = vcmp.eq.s32.totalorder %v41_v6, %v74_v7  ;;  %vm70_vm5 = vmor %vm464_vm10, %vm68_vm13 }
  0xb4   :  { %vm83_vm1 = vmor %vm75_vm11, %vm81_vm12 }
  0xb5   :  { %vm84_vm2 = vmor %vm76_vm14, %vm82_vm15 }
  0xb6   :  { %vm85_vm3 = vmor %vm69_vm0, %vm83_vm1 }
  0xb7   :  { %v90_v11 = vpop.permute.xlu1 %89  ;;  %vm86_vm7 = vmor %vm70_vm5, %vm84_vm2 }
  0xb8   :  { %vm91_vm4 = vcmp.eq.s32.totalorder %v40_v3, %v90_v11  ;;  %vm92_vm8 = vcmp.eq.s32.totalorder %v41_v6, %v90_v11 }
  0xbc   :  { %v96_v12 = vpop.permute.xlu1 %95 }
  0xbd   :  { %vm97_vm6 = vcmp.eq.s32.totalorder %v40_v3, %v96_v12  ;;  %vm98_vm9 = vcmp.eq.s32.totalorder %v41_v6, %v96_v12 }
  0xbe   :  { %vm99_vm11 = vmor %vm91_vm4, %vm97_vm6 }
  0xbf   :  { %vm100_vm12 = vmor %vm92_vm8, %vm98_vm9 }
  0xc0   :  { %vm101_vm14 = vmor %vm85_vm3, %vm99_vm11 }
  0xc1   :  { %vm102_vm15 = vmor %vm86_vm7, %vm100_vm12  ;;  %v226_v14 = vsel %vm101_vm14, 1.0, %v402_v13 }
  0xc2   :  { %v227_v15 = vsel %vm102_vm15, 1.0, %v402_v13 }
  0xc3   :  { %203 = vmatprep.mubr.f32.mxu0 %v227_v15 }
  0xc4   :  { %204 = vmatmul.mubr.f32.vlgmr.msra.gmra.mrb[0].mxu0 %v226_v14 }
 0x197   :  { %v260_v16 = vpop.f32.mrb[0].mxu0 }
 0x198   :  { %v261_v17 = vpop.f32.mrb[1].mxu0 }
 0x199   :  { %v262_v18 = vadd.f32 %v261_v17, %v260_v16 }
 0x19b   :  { %209 = vst [vmem:[#allocation7] sm:$0xff] %v262_v18 }
 0x19c   :  { %373 = shalt.err (!%p370_p6)
}
 0x19d   :  { %s374_s10 = scalar_lea.hbm %s486_s2, 128 }
 0x19e   :  { %p375_p7 = scmp.ne.s32.totalorder %s486_s2, %s374_s10  ;;  %p378_p8 = scmp.lt.u32.totalorder %s374_s10, %s486_s2 }
 0x1a0   :  { %p380_p9 = pnand %p378_p8, %p375_p7 }
 0x1a2   :  { %383 = shalt.err (!%p380_p9)
}
 0x1a3   :  { %219 = dma.vmem_to_hbm [thread:$0]  %s217_s6, 128, %s486_s2, [#allocation4]  }
 0x1a4   :  { %388 = dma.done.wait [#allocation4], 128  }
 0x1a5   :  { %389 = vsyncadd [#allocation4], 4294967168 }
 0x1a6   :  { %223 = vsyncpa [#allocation3], 1 }
 0x1a7   :  { %224 = vsyncpa [#allocation6], 1 }
 0x1a8   :  { %225 = vsyncpa [#allocation4], 1 }

// kernel: tpu_custom_call.1
= control target key start
LH: loop header
LB: loop body
LE: loop exit
PB: predicated region body
PF: predicated region fallthrough
CT: control target
= control target key end

     0   :  { %7 = vsyncpa [#allocation3], 0  ;;  %s484_s0 = inlined_call_operand.hbm [shape: s32[8,8], index: 0, kind: input, shape index: {}]   ;;  %s485_s1 = inlined_call_operand.hbm [shape: f32[256,128], index: 1, kind: input, shape index: {}]   ;;  %s486_s2 = inlined_call_operand.hbm [shape: f32[8,128], index: 2, kind: output, shape index: {}]  }
   0x1   :  { %8 = vsyncpa [#allocation6], 0 }
   0x2   :  { %9 = vsyncpa [#allocation4], 0  ;;  %s390_s9 = smov [#allocation2]   ;;  %s391_s11 = smov [#allocation5]  }
   0x3   :  { %s16_s10 = sshll.u32 %s390_s9, 4  ;;  %s25_s12 = sshll.u32 %s391_s11, 4  ;;  %s17_s10 = int_to_ptr.vmem [resolvable:$true] %s16_s10  ;;  %s419_s12 = int_to_ptr.vmem [resolvable:$true] %s25_s12 }
   0x4   :  { %s318_s15 = scalar_lea.hbm %s484_s0, 128 }
   0x5   :  { %p319_p0 = scmp.ne.s32.totalorder %s484_s0, %s318_s15  ;;  %p322_p1 = scmp.lt.u32.totalorder %s318_s15, %s484_s0 }
   0x7   :  { %p324_p2 = pnand %p322_p1, %p319_p0 }
   0x9   :  { %327 = shalt.err (!%p324_p2)
}
   0xa   :  { %s328_s20 = scalar_lea.vmem %s17_s10, 128  ;;  %p333_p4 = scmp.lt.s32.totalorder %s17_s10, %s17_s10 }
   0xb   :  { %p329_p3 = scmp.ne.s32.totalorder %s17_s10, %s328_s20  ;;  %p334_p5 = scmp.lt.s32.totalorder %s328_s20, %s328_s20 }
   0xd   :  { %p335_p6 = por %p334_p5, %p333_p4 }
   0xf   :  { %p336_p7 = pnand %p335_p6, %p329_p3 }
  0x11   :  { %339 = shalt.err (!%p336_p7)
}
  0x12   :  { %19 = dma.hbm_to_vmem [thread:$0]  %s484_s0, 128, %s17_s10, [#allocation3]  }
  0x13   :  { %s340_s25 = scalar_lea.hbm %s485_s1, 4096 }
  0x14   :  { %p341_p8 = scmp.ne.s32.totalorder %s485_s1, %s340_s25  ;;  %p344_p9 = scmp.lt.u32.totalorder %s340_s25, %s485_s1 }
  0x16   :  { %p346_p10 = pnand %p344_p9, %p341_p8 }
  0x18   :  { %349 = shalt.err (!%p346_p10)
}
  0x19   :  { %s350_s30 = scalar_lea.vmem %s419_s12, 4096  ;;  %p355_p12 = scmp.lt.s32.totalorder %s419_s12, %s419_s12 }
  0x1a   :  { %p351_p11 = scmp.ne.s32.totalorder %s419_s12, %s350_s30  ;;  %p356_p13 = scmp.lt.s32.totalorder %s350_s30, %s350_s30 }
  0x1c   :  { %p357_p0 = por %p356_p13, %p355_p12 }
  0x1e   :  { %p358_p1 = pnand %p357_p0, %p351_p11 }
  0x20   :  { %361 = shalt.err (!%p358_p1)
}
  0x21   :  { %s392_s0 = smov 128   ;;  %s393_s3 = smov 8  }
  0x22   :  { %31 = dma.hbm_to_vmem [thread:$0]  %s485_s1, 4096, %s419_s12, [#allocation6], %s392_s0, %s392_s0, %s393_s3  }
  0x23   :  { %384 = dma.done.wait [#allocation3], 128  }
  0x24   :  { %385 = vsyncadd [#allocation3], 4294967168 }
  0x25   :  { %386 = dma.done.wait [#allocation6], 4096  }
  0x26   :  { %387 = vsyncadd [#allocation6], 4294963200  ;;  %v394_v0 = vmov 2   ;;  %v395_v1 = vmov 0   ;;  %v450_v2 = vld [vmem:[#allocation2] sm:$0xff]  ;;  %v123_v3 = vld [vmem:[#allocation5 + $0x80] sm:$0xff] }
  0x27   :  { %311 = vset.pattern.permute.xlu1 %v394_v0  ;;  %309 = vset.pattern.permute.xlu0 %v395_v1  ;;  %v124_v4 = vld [vmem:[#allocation5 + $0x88] sm:$0xff]  ;;  %v55_v5 = vadd.s32 64, %v450_v2  ;;  %v107_v6 = vld [vmem:[#allocation5] sm:$0xff]  ;;  %v47_v8 = vadd.s32 32, %v450_v2  ;;  %v125_v10 = vld [vmem:[#allocation5 + $0x90] sm:$0xff]  ;;  %v61_v18 = vadd.s32 96, %v450_v2 }
  0x28   :  { %43 = vperm.xlu0 %309, %v450_v2   ;;  %v108_v7 = vld [vmem:[#allocation5 + $0x8] sm:$0xff]  ;;  %v263_v9 = vpack.c.bf16 %v124_v4, %v123_v3  ;;  %v126_v11 = vld [vmem:[#allocation5 + $0x98] sm:$0xff]  ;;  %v109_v12 = vld [vmem:[#allocation5 + $0x10] sm:$0xff]  ;;  %v396_v19 = vmov 1   ;;  %v397_v24 = vmov 3   ;;  %v77_v25 = vadd.s32 160, %v450_v2 }
  0x29   :  { %57 = vperm.xlu1 %311, %v55_v5   ;;  %v265_v13 = vpack.c.bf16 %v108_v7, %v107_v6  ;;  %v267_v14 = vpack.c.bf16 %v126_v11, %v125_v10  ;;  %v110_v15 = vld [vmem:[#allocation5 + $0x18] sm:$0xff]  ;;  %v127_v16 = vld [vmem:[#allocation5 + $0xa0] sm:$0xff]  ;;  %v128_v17 = vld [vmem:[#allocation5 + $0xa8] sm:$0xff]  ;;  %v71_v28 = vadd.s32 128, %v450_v2  ;;  %v398_v30 = vmov 5   ;;  %s403_s1 = smov [#allocation7]  }
  0x2a   :  { %264 = vmatprep.subr.bf16.mxu0 %v263_v9  ;;  %v269_v20 = vpack.c.bf16 %v110_v15, %v109_v12  ;;  %v271_v21 = vpack.c.bf16 %v128_v17, %v127_v16  ;;  %v111_v22 = vld [vmem:[#allocation5 + $0x20] sm:$0xff]  ;;  %v112_v23 = vld [vmem:[#allocation5 + $0x28] sm:$0xff]  ;;  %v129_v26 = vld [vmem:[#allocation5 + $0xb0] sm:$0xff]  ;;  %v399_v36 = vmov 4   ;;  %v87_v38 = vadd.s32 192, %v450_v2  ;;  %s216_s6 = sshll.u32 %s403_s1, 4  ;;  %s217_s6 = int_to_ptr.vmem [resolvable:$true] %s216_s6 }
  0x2b   :  { %266 = vmatpush3.bf16.msra.mxu0 %v265_v13  ;;  %v130_v27 = vld [vmem:[#allocation5 + $0xb8] sm:$0xff]  ;;  %v273_v29 = vpack.c.bf16 %v112_v23, %v111_v22  ;;  %v113_v32 = vld [vmem:[#allocation5 + $0x30] sm:$0xff]  ;;  %v131_v34 = vld [vmem:[#allocation5 + $0xc0] sm:$0xff]  ;;  %v400_v44 = vmov 7   ;;  %v401_v45 = vmov 6   ;;  %v93_v50 = vadd.s32 224, %v450_v2  ;;  %p367_p3 = scmp.lt.s32.totalorder %s217_s6, %s217_s6 }
  0x2c   :  { %310 = vset.pattern.permute.xlu0 %v396_v19  ;;  %268 = vmatprep.subr.bf16.mxu0 %v267_v14  ;;  %v275_v31 = vpack.c.bf16 %v130_v27, %v129_v26  ;;  %v114_v33 = vld [vmem:[#allocation5 + $0x38] sm:$0xff]  ;;  %v132_v35 = vld [vmem:[#allocation5 + $0xc8] sm:$0xff]  ;;  %v115_v40 = vld [vmem:[#allocation5 + $0x40] sm:$0xff]  ;;  %v39_v2 = vlaneseq  ;;  %v402_v13 = vmov 0.0   ;;  %s362_s7 = scalar_lea.vmem %s217_s6, 128 }
  0x2d   :  { %49 = vperm.xlu0 %310, %v47_v8   ;;  %312 = vset.pattern.permute.xlu1 %v397_v24  ;;  %v277_v37 = vpack.c.bf16 %v114_v33, %v113_v32  ;;  %v279_v39 = vpack.c.bf16 %v132_v35, %v131_v34  ;;  %v116_v41 = vld [vmem:[#allocation5 + $0x48] sm:$0xff]  ;;  %v133_v42 = vld [vmem:[#allocation5 + $0xd0] sm:$0xff]  ;;  %v134_v43 = vld [vmem:[#allocation5 + $0xd8] sm:$0xff]  ;;  %p363_p2 = scmp.ne.s32.totalorder %s217_s6, %s362_s7  ;;  %p368_p4 = scmp.lt.s32.totalorder %s362_s7, %s362_s7 }
  0x2e   :  { %63 = vperm.xlu1 %312, %v61_v18   ;;  %v281_v46 = vpack.c.bf16 %v116_v41, %v115_v40  ;;  %v283_v47 = vpack.c.bf16 %v134_v43, %v133_v42  ;;  %v117_v48 = vld [vmem:[#allocation5 + $0x50] sm:$0xff]  ;;  %v118_v49 = vld [vmem:[#allocation5 + $0x58] sm:$0xff]  ;;  %v135_v51 = vld [vmem:[#allocation5 + $0xe0] sm:$0xff]  ;;  %v40_v3 = vand.u32 127, %v39_v2 }
  0x2f   :  { %270 = vmatpush3.bf16.msra.mxu0 %v269_v20  ;;  %v136_v52 = vld [vmem:[#allocation5 + $0xe8] sm:$0xff]  ;;  %v285_v53 = vpack.c.bf16 %v118_v49, %v117_v48  ;;  %v119_v55 = vld [vmem:[#allocation5 + $0x60] sm:$0xff]  ;;  %v137_v57 = vld [vmem:[#allocation5 + $0xf0] sm:$0xff]  ;;  %p369_p5 = por %p368_p4, %p367_p3 }
  0x30   :  { %272 = vmatprep.subr.bf16.mxu0 %v271_v21  ;;  %v287_v54 = vpack.c.bf16 %v136_v52, %v135_v51  ;;  %v120_v56 = vld [vmem:[#allocation5 + $0x68] sm:$0xff]  ;;  %v138_v58 = vld [vmem:[#allocation5 + $0xf8] sm:$0xff]  ;;  %v121_v61 = vld [vmem:[#allocation5 + $0x70] sm:$0xff]  ;;  %v41_v6 = vadd.s32 128, %v40_v3 }
  0x31   :  { %314 = vset.pattern.permute.xlu0 %v398_v30  ;;  %v289_v59 = vpack.c.bf16 %v120_v56, %v119_v55  ;;  %v291_v60 = vpack.c.bf16 %v138_v58, %v137_v57  ;;  %v122_v62 = vld [vmem:[#allocation5 + $0x78] sm:$0xff]  ;;  %p370_p6 = pnand %p369_p5, %p363_p2 }
  0x32   :  { %79 = vperm.xlu0 %314, %v77_v25   ;;  %313 = vset.pattern.permute.xlu1 %v399_v36  ;;  %v293_v63 = vpack.c.bf16 %v122_v62, %v121_v61 }
  0x33   :  { %73 = vperm.xlu1 %313, %v71_v28   ;;  %274 = vmatpush3.bf16.msra.mxu0 %v273_v29 }
  0x34   :  { %276 = vmatprep.subr.bf16.mxu0 %v275_v31 }
  0x36   :  { %317 = vset.pattern.permute.xlu0 %v400_v44 }
  0x37   :  { %315 = vset.pattern.permute.xlu1 %v401_v45  ;;  %278 = vmatpush3.bf16.msra.mxu0 %v277_v37 }
  0x38   :  { %89 = vperm.xlu1 %315, %v87_v38   ;;  %280 = vmatprep.subr.bf16.mxu0 %v279_v39 }
  0x3b   :  { %282 = vmatpush3.bf16.msra.mxu0 %v281_v46 }
  0x3c   :  { %316 = vset.pattern.permute.xlu1 %v400_v44  ;;  %284 = vmatprep.subr.bf16.mxu0 %v283_v47 }
  0x3d   :  { %95 = vperm.xlu1 %316, %v93_v50  }
  0x3f   :  { %286 = vmatpush3.bf16.msra.mxu0 %v285_v53 }
  0x40   :  { %288 = vmatprep.subr.bf16.mxu0 %v287_v54 }
  0x43   :  { %290 = vmatpush3.bf16.msra.mxu0 %v289_v59 }
  0x44   :  { %292 = vmatprep.subr.bf16.mxu0 %v291_v60 }
  0x47   :  { %294 = vmatpush3.bf16.msra.mxu0 %v293_v63 }
  0xa7   :  { %v44_v0 = vpop.permute.xlu0 %43 }
  0xa8   :  { %v58_v1 = vpop.permute.xlu1 %57  ;;  %vm45_vm0 = vcmp.eq.s32.totalorder %v40_v3, %v44_v0  ;;  %vm46_vm3 = vcmp.eq.s32.totalorder %v41_v6, %v44_v0 }
  0xa9   :  { %vm59_vm5 = vcmp.eq.s32.totalorder %v40_v3, %v58_v1  ;;  %vm60_vm9 = vcmp.eq.s32.totalorder %v41_v6, %v58_v1 }
  0xac   :  { %v50_v5 = vpop.permute.xlu0 %49 }
  0xad   :  { %v64_v4 = vpop.permute.xlu1 %63  ;;  %vm51_vm1 = vcmp.eq.s32.totalorder %v40_v3, %v50_v5  ;;  %vm52_vm4 = vcmp.eq.s32.totalorder %v41_v6, %v50_v5 }
  0xae   :  { %vm65_vm2 = vcmp.eq.s32.totalorder %v40_v3, %v64_v4  ;;  %vm66_vm6 = vcmp.eq.s32.totalorder %v41_v6, %v64_v4  ;;  %vm460_vm7 = vmor %vm45_vm0, %vm51_vm1 }
  0xaf   :  { %vm67_vm8 = vmor %vm59_vm5, %vm65_vm2 }
  0xb0   :  { %vm464_vm10 = vmor %vm46_vm3, %vm52_vm4 }
  0xb1   :  { %v80_v8 = vpop.permute.xlu0 %79  ;;  %vm68_vm13 = vmor %vm60_vm9, %vm66_vm6 }
  0xb2   :  { %v74_v7 = vpop.permute.xlu1 %73  ;;  %vm81_vm12 = vcmp.eq.s32.totalorder %v40_v3, %v80_v8  ;;  %vm82_vm15 = vcmp.eq.s32.totalorder %v41_v6, %v80_v8  ;;  %vm69_vm0 = vmor %vm460_vm7, %vm67_vm8 }
  0xb3   :  { %vm75_vm11 = vcmp.eq.s32.totalorder %v40_v3, %v74_v7  ;;  %vm76_vm14 = vcmp.eq.s32.totalorder %v41_v6, %v74_v7  ;;  %vm70_vm5 = vmor %vm464_vm10, %vm68_vm13 }
  0xb4   :  { %vm83_vm1 = vmor %vm75_vm11, %vm81_vm12 }
  0xb5   :  { %vm84_vm2 = vmor %vm76_vm14, %vm82_vm15 }
  0xb6   :  { %vm85_vm3 = vmor %vm69_vm0, %vm83_vm1 }
  0xb7   :  { %v90_v11 = vpop.permute.xlu1 %89  ;;  %vm86_vm7 = vmor %vm70_vm5, %vm84_vm2 }
  0xb8   :  { %vm91_vm4 = vcmp.eq.s32.totalorder %v40_v3, %v90_v11  ;;  %vm92_vm8 = vcmp.eq.s32.totalorder %v41_v6, %v90_v11 }
  0xbc   :  { %v96_v12 = vpop.permute.xlu1 %95 }
  0xbd   :  { %vm97_vm6 = vcmp.eq.s32.totalorder %v40_v3, %v96_v12  ;;  %vm98_vm9 = vcmp.eq.s32.totalorder %v41_v6, %v96_v12 }
  0xbe   :  { %vm99_vm11 = vmor %vm91_vm4, %vm97_vm6 }
  0xbf   :  { %vm100_vm12 = vmor %vm92_vm8, %vm98_vm9 }
  0xc0   :  { %vm101_vm14 = vmor %vm85_vm3, %vm99_vm11 }
  0xc1   :  { %vm102_vm15 = vmor %vm86_vm7, %vm100_vm12  ;;  %v226_v14 = vsel %vm101_vm14, 1.0, %v402_v13 }
  0xc2   :  { %v227_v15 = vsel %vm102_vm15, 1.0, %v402_v13 }
  0xc3   :  { %203 = vmatprep.mubr.f32.mxu0 %v227_v15 }
  0xc4   :  { %204 = vmatmul.mubr.f32.vlgmr.msra.gmra.mrb[0].mxu0 %v226_v14 }
 0x197   :  { %v260_v16 = vpop.f32.mrb[0].mxu0 }
 0x198   :  { %v261_v17 = vpop.f32.mrb[1].mxu0 }
 0x199   :  { %v262_v18 = vadd.f32 %v261_v17, %v260_v16 }
 0x19b   :  { %209 = vst [vmem:[#allocation7] sm:$0xff] %v262_v18 }
 0x19c   :  { %373 = shalt.err (!%p370_p6)
}
 0x19d   :  { %s374_s10 = scalar_lea.hbm %s486_s2, 128 }
 0x19e   :  { %p375_p7 = scmp.ne.s32.totalorder %s486_s2, %s374_s10  ;;  %p378_p8 = scmp.lt.u32.totalorder %s374_s10, %s486_s2 }
 0x1a0   :  { %p380_p9 = pnand %p378_p8, %p375_p7 }
 0x1a2   :  { %383 = shalt.err (!%p380_p9)
}
 0x1a3   :  { %219 = dma.vmem_to_hbm [thread:$0]  %s217_s6, 128, %s486_s2, [#allocation4]  }
 0x1a4   :  { %388 = dma.done.wait [#allocation4], 128  }
 0x1a5   :  { %389 = vsyncadd [#allocation4], 4294967168 }
 0x1a6   :  { %223 = vsyncpa [#allocation3], 1 }
 0x1a7   :  { %224 = vsyncpa [#allocation6], 1 }
 0x1a8   :  { %225 = vsyncpa [#allocation4], 1 }

</bundles_post_ra>
